<compile_context>
chip_gen: v6e
topology: v6e:2x2x1
jax: 0.10.0
libtpu: 0.0.40
codegen_flags: <defaults>
</compile_context>

<pallas_src>
import functools
import math

import jax
import jax.numpy as jnp
from jax import lax
from jax.experimental import pallas as pl
from jax.experimental.pallas import tpu as pltpu


def _vmem_limit_bytes():
    """Generation-aware VMEM scoped limit: ~7/8 of physical, capped at 112 MiB."""
    try:
        cap = int(pltpu.get_tpu_info().vmem_capacity_bytes)
    except Exception:
        cap = 64 * 1024 * 1024          # conservative fallback (v7x per-core size)
    return int(min(cap * 7 // 8, 112 * 1024 * 1024))


# ----------------------------------------------------------------------------
# Kernel 1: conditioning encoder (whole batch in one grid step)
#   proj_static_img -> cond_obs_emb -> (+time token, +language token, +cond pos emb) -> Mish MLP
# ----------------------------------------------------------------------------

def _cond_encoder_kernel(patch_ref, lang_ref, time_ref, cpos_ref,
                         proj_w_ref, proj_b_ref, cond_w_ref, cond_b_ref,
                         enc_w1_ref, enc_b1_ref, enc_w2_ref, enc_b2_ref,
                         patch_out_ref, mem_ref):
    B, Tc, Dimg = patch_ref.shape
    hid = proj_w_ref.shape[1]
    E = cond_w_ref.shape[1]

    # proj_static_img on all cond rows; rows 0 and Tc-1 are dummy slots overwritten below by the
    # time / language tokens (2 wasted rows out of Tc -- negligible, keeps shapes rectangular).
    p2 = patch_ref[...].reshape(B * Tc, Dimg)
    pe = (jnp.dot(p2.astype(jnp.bfloat16), proj_w_ref[...],
                  preferred_element_type=jnp.float32) + proj_b_ref[...])       # (B*Tc, hid)
    patch_out_ref[...] = pe.reshape(B, Tc, hid)

    # cond_obs_emb on [patch tokens ; language token]
    c_patch = (jnp.dot(pe.astype(jnp.bfloat16), cond_w_ref[...],
                       preferred_element_type=jnp.float32)
               + cond_b_ref[...]).reshape(B, Tc, E)
    lang2 = lang_ref[...].reshape(B, lang_ref.shape[2])
    c_lang = (jnp.dot(lang2.astype(jnp.bfloat16), cond_w_ref[...],
                      preferred_element_type=jnp.float32) + cond_b_ref[...])    # (B, E)

    # row 0 = diffusion-time token, rows 1..P = patch tokens, row Tc-1 = language token
    row = lax.broadcasted_iota(jnp.int32, (B, Tc, 1), 1)
    cond = jnp.where(row == 0, time_ref[...],
                     jnp.where(row == Tc - 1, c_lang[:, None, :], c_patch))     # (B, Tc, E)
    xc = (cond + cpos_ref[...]).reshape(B * Tc, E)

    # cond encoder: Linear -> Mish -> Linear  (n_cond_layers == 0 path)
    h = (jnp.dot(xc.astype(jnp.bfloat16), enc_w1_ref[...],
                 preferred_element_type=jnp.float32) + enc_b1_ref[...])
    softplus = jnp.maximum(h, 0.0) + jnp.log(1.0 + jnp.exp(-jnp.abs(h)))        # overflow-safe
    h = h * jnp.tanh(softplus)                                                  # Mish
    mem = (jnp.dot(h.astype(jnp.bfloat16), enc_w2_ref[...],
                   preferred_element_type=jnp.float32) + enc_b2_ref[...])
    mem_ref[...] = mem.reshape(B, Tc, E)


def _cond_encode(p, cfg, patch_pad, language_embedding, time_emb):
    B, Tc, _ = patch_pad.shape
    hid = cfg["hidden_size"]
    E = cfg["n_emb"]
    # Whole batch in one grid step: total weights + activations are only a few MiB, so a per-b
    # grid would be dominated by per-step overhead and tiny per-b matmuls.
    return pl.pallas_call(
        _cond_encoder_kernel,
        out_shape=(jax.ShapeDtypeStruct((B, Tc, hid), jnp.float32),
                   jax.ShapeDtypeStruct((B, Tc, E), jnp.float32)),
        compiler_params=pltpu.CompilerParams(vmem_limit_bytes=_vmem_limit_bytes()),
    )(patch_pad, language_embedding, time_emb, p["cond_pos_emb"],
      p["proj_w"], p["proj_b"], p["cond_w"], p["cond_b"],
      p["enc_w1"], p["enc_b1"], p["enc_w2"], p["enc_b2"])


# ----------------------------------------------------------------------------
# Kernel 2: fused decoder trunk
#   grid = (batch_blocks ["parallel"], layer ["arbitrary"])
#   per-layer weights are stacked (L, ...) lane-dense tensors streamed / double-buffered over
#   the layer axis; a whole batch block's (bt*T, E) activation stays resident in VMEM scratch.
# ----------------------------------------------------------------------------

def _trunk_kernel(act_ref, in_w_ref, in_bp_ref, mem_ref, cmask_ref, mmask_ref,
                  ln_g_ref, ln_b_ref,
                  w_sa_qkv_ref, b_sa_qkv_ref,
                  w_ca_q_ref, b_ca_q_ref, w_ca_kv_ref, b_ca_kv_ref,
                  w_o_ref, b_o_ref,
                  ff_w1_ref, ff_b1_ref, ff_w2_ref, ff_b2_ref,
                  lnf_g_ref, lnf_b_ref, head_w_ref, head_b_ref,
                  out_ref, x_sc, *, n_head, d_head):
    l = pl.program_id(1)
    bt, T, A = act_ref.shape
    Tc = mem_ref.shape[1]
    E = n_head * d_head
    scale = 1.0 / math.sqrt(d_head)
    bf = jnp.bfloat16

    @pl.when(l == 0)
    def _init():
        # input_emb (tiny K=action_dim matmul) + bias + positional embedding, folded into the
        # trunk so it never becomes a standalone sub-128-lane kernel.
        a2 = act_ref[...].reshape(bt * T, A)
        x0 = jnp.dot(a2, in_w_ref[...], preferred_element_type=jnp.float32)
        x_sc[...] = (x0.reshape(bt, T, E) + in_bp_ref[...]).reshape(bt * T, E)

    def _ln(v, g, b):
        mu = jnp.mean(v, axis=-1, keepdims=True)
        vc = v - mu
        var = jnp.mean(vc * vc, axis=-1, keepdims=True)
        return vc * lax.rsqrt(var + 1e-5) * g + b                     # nn.LayerNorm eps

    def _attn_core(q2d, k2d, v2d, mask, wo, bo, Tq, Tkv):
        # q2d: (bt*Tq, E), k2d/v2d: (bt*Tkv, E).  Heads only appear in the small per-head
        # score / context matmuls; contexts are re-concatenated lane-dense so the output
        # projection is one full-width MXU matmul.
        # NOTE: the additive -1e9 mask is safe because no attention row is fully masked by the
        # causal / memory masks used here.
        ctxs = []
        for h in range(n_head):
            sl = slice(h * d_head, (h + 1) * d_head)
            qh = (q2d[:, sl] * scale).astype(bf).reshape(bt, Tq, d_head)
            kh = k2d[:, sl].astype(bf).reshape(bt, Tkv, d_head)
            vh = v2d[:, sl].astype(bf).reshape(bt, Tkv, d_head)
            s = jnp.einsum('btd,bsd->bts', qh, kh,
                           preferred_element_type=jnp.float32) + mask          # (bt, Tq, Tkv)
            s = s - jnp.max(s, axis=-1, keepdims=True)
            pr = jnp.exp(s)
            pr = pr * pl.reciprocal(jnp.sum(pr, axis=-1, keepdims=True), approx=True)
            ctxs.append(jnp.einsum('bts,bsd->btd', pr.astype(bf), vh,
                                   preferred_element_type=jnp.float32))
        ctx = jnp.concatenate(ctxs, axis=-1).reshape(bt * Tq, E)
        return jnp.dot(ctx.astype(bf), wo, preferred_element_type=jnp.float32) + bo

    x = x_sc[...]                                                               # (bt*T, E)

    # --- causal self-attention (pre-LN) ----------------------------------------------------
    h1 = _ln(x, ln_g_ref[0, 0], ln_b_ref[0, 0])
    qkv = (jnp.dot(h1.astype(bf), w_sa_qkv_ref[0],
                   preferred_element_type=jnp.float32) + b_sa_qkv_ref[0])       # (bt*T, 3E)
    x = x + _attn_core(qkv[:, :E], qkv[:, E:2 * E], qkv[:, 2 * E:],
                       cmask_ref[...], w_o_ref[0, 0], b_o_ref[0, 0], T, T)

    # --- masked cross-attention over the cond memory ---------------------------------------
    h2 = _ln(x, ln_g_ref[0, 1], ln_b_ref[0, 1])
    qc = (jnp.dot(h2.astype(bf), w_ca_q_ref[0],
                  preferred_element_type=jnp.float32) + b_ca_q_ref[0])          # (bt*T, E)
    mem2 = mem_ref[...].reshape(bt * Tc, E)
    kvc = (jnp.dot(mem2.astype(bf), w_ca_kv_ref[0],
                   preferred_element_type=jnp.float32) + b_ca_kv_ref[0])        # (bt*Tc, 2E)
    x = x + _attn_core(qc, kvc[:, :E], kvc[:, E:],
                       mmask_ref[...], w_o_ref[0, 1], b_o_ref[0, 1], T, Tc)

    # --- GELU FFN ---------------------------------------------------------------------------
    h3 = _ln(x, ln_g_ref[0, 2], ln_b_ref[0, 2])
    y = (jnp.dot(h3.astype(bf), ff_w1_ref[0],
                 preferred_element_type=jnp.float32) + ff_b1_ref[0])
    # TODO(synk): PyTorch F.gelu default is exact erf-GELU; tanh approximation used for robust
    #             Mosaic lowering (~1e-3 relative difference).
    y = jax.nn.gelu(y, approximate=True)
    x = x + (jnp.dot(y.astype(bf), ff_w2_ref[0],
                     preferred_element_type=jnp.float32) + ff_b2_ref[0])
    x_sc[...] = x

    @pl.when(l == pl.num_programs(1) - 1)
    def _finalize():
        xf = _ln(x, lnf_g_ref[0], lnf_b_ref[0])
        o = (jnp.dot(xf.astype(bf), head_w_ref[...],
                     preferred_element_type=jnp.float32) + head_b_ref[...])
        out_ref[...] = o.reshape(bt, T, A)


def _decoder_trunk(p, cfg, noisy_actions, memory, causal_mask, mem_mask, in_bias_pos,
                   batch_block=None):
    B, T, A = noisy_actions.shape
    Tc = memory.shape[1]
    E = cfg["n_emb"]
    H = cfg["n_head"]
    d = E // H
    F = 4 * E
    L = cfg["n_layer"]

    # Batch-amortized weight DMA: each grid step processes a whole batch block, so the ~L x
    # (per-layer weights) HBM stream happens once per block instead of once per batch element.
    bt = min(B, 8) if batch_block is None else max(1, min(batch_block, B))
    NB = -(-B // bt)
    Bp = NB * bt
    if Bp != B:
        pad = ((0, Bp - B), (0, 0), (0, 0))
        noisy_actions = jnp.pad(noisy_actions, pad)
        memory = jnp.pad(memory, pad)

    kern = functools.partial(_trunk_kernel, n_head=H, d_head=d)
    out = pl.pallas_call(
        kern,
        out_shape=jax.ShapeDtypeStruct((Bp, T, A), jnp.float32),
        grid=(NB, L),
        in_specs=[
            pl.BlockSpec((bt, T, A), lambda b, l: (b, 0, 0)),        # noisy_actions
            pl.BlockSpec((A, E), lambda b, l: (0, 0)),               # input_emb weight
            pl.BlockSpec((1, T, E), lambda b, l: (0, 0, 0)),         # input bias + pos emb
            pl.BlockSpec((bt, Tc, E), lambda b, l: (b, 0, 0)),       # cond memory
            pl.BlockSpec((T, T), lambda b, l: (0, 0)),               # causal mask
            pl.BlockSpec((T, Tc), lambda b, l: (0, 0)),              # memory mask
            pl.BlockSpec((1, 3, E), lambda b, l: (l, 0, 0)),         # LN gammas
            pl.BlockSpec((1, 3, E), lambda b, l: (l, 0, 0)),         # LN betas
            pl.BlockSpec((1, E, 3 * E), lambda b, l: (l, 0, 0)),     # self-attn fused QKV W
            pl.BlockSpec((1, 1, 3 * E), lambda b, l: (l, 0, 0)),     # self-attn fused QKV b
            pl.BlockSpec((1, E, E), lambda b, l: (l, 0, 0)),         # cross-attn Q W
            pl.BlockSpec((1, 1, E), lambda b, l: (l, 0, 0)),         # cross-attn Q b
            pl.BlockSpec((1, E, 2 * E), lambda b, l: (l, 0, 0)),     # cross-attn fused KV W
            pl.BlockSpec((1, 1, 2 * E), lambda b, l: (l, 0, 0)),     # cross-attn fused KV b
            pl.BlockSpec((1, 2, E, E), lambda b, l: (l, 0, 0, 0)),   # out-proj weights [self,cross]
            pl.BlockSpec((1, 2, E), lambda b, l: (l, 0, 0)),         # out-proj biases
            pl.BlockSpec((1, E, F), lambda b, l: (l, 0, 0)),         # FFN W1
            pl.BlockSpec((1, 1, F), lambda b, l: (l, 0, 0)),         # FFN b1
            pl.BlockSpec((1, F, E), lambda b, l: (l, 0, 0)),         # FFN W2
            pl.BlockSpec((1, 1, E), lambda b, l: (l, 0, 0)),         # FFN b2
            pl.BlockSpec((1, E), lambda b, l: (0, 0)),               # ln_f gamma
            pl.BlockSpec((1, E), lambda b, l: (0, 0)),               # ln_f beta
            pl.BlockSpec((E, A), lambda b, l: (0, 0)),               # head weight
            pl.BlockSpec((1, A), lambda b, l: (0, 0)),               # head bias
        ],
        out_specs=pl.BlockSpec((bt, T, A), lambda b, l: (b, 0, 0)),
        scratch_shapes=[pltpu.VMEM((bt * T, E), jnp.float32)],
        compiler_params=pltpu.CompilerParams(
            dimension_semantics=("parallel", "arbitrary"),
            vmem_limit_bytes=_vmem_limit_bytes()),
    )(noisy_actions, p["in_w"], in_bias_pos, memory, causal_mask, mem_mask,
      p["ln_g"], p["ln_b"],
      p["w_sa_qkv"], p["b_sa_qkv"], p["w_ca_q"], p["b_ca_q"],
      p["w_ca_kv"], p["b_ca_kv"], p["w_o"], p["b_o"],
      p["ff_w1"], p["ff_b1"], p["ff_w2"], p["ff_b2"],
      p["lnf_g"], p["lnf_b"], p["head_w"], p["head_b"])
    return out[:B]


# ----------------------------------------------------------------------------
# Parameter construction (deterministic, synthetic) -- lane-dense fused layouts
# ----------------------------------------------------------------------------

def init_params(key, cfg):
    E = cfg["n_emb"]
    F = 4 * E
    L = cfg["n_layer"]
    A = cfg["action_dim"]
    T = cfg["horizon"]
    hid = cfg["hidden_size"]
    Dimg = cfg["img_feat_dim"]
    Tc = cfg["n_obs"] + 2  # time token + patch tokens + language token

    ks = iter(jax.random.split(key, 32))
    rnd = lambda k, shape: jax.random.normal(k, shape, jnp.float32) * 0.02
    bf = jnp.bfloat16

    p = {}
    # TrajPredictPolicy.proj_static_img
    p["proj_w"] = rnd(next(ks), (Dimg, hid)).astype(bf)
    p["proj_b"] = jnp.zeros((1, hid), jnp.float32)
    # TransformerForDiffusion embeddings / cond encoder
    p["cond_w"] = rnd(next(ks), (hid, E)).astype(bf)
    p["cond_b"] = jnp.zeros((1, E), jnp.float32)
    p["in_w"] = rnd(next(ks), (A, E))                      # tiny K=A matmul kept f32
    p["in_b"] = jnp.zeros((E,), jnp.float32)
    p["pos_emb"] = rnd(next(ks), (1, T, E))
    p["cond_pos_emb"] = rnd(next(ks), (1, Tc, E))
    p["enc_w1"] = rnd(next(ks), (E, F)).astype(bf)
    p["enc_b1"] = jnp.zeros((1, F), jnp.float32)
    p["enc_w2"] = rnd(next(ks), (F, E)).astype(bf)
    p["enc_b2"] = jnp.zeros((1, E), jnp.float32)
    # decoder stack: combined lane-dense projections, stacked over layer
    p["w_sa_qkv"] = rnd(next(ks), (L, E, 3 * E)).astype(bf)
    p["b_sa_qkv"] = jnp.zeros((L, 1, 3 * E), jnp.float32)
    p["w_ca_q"] = rnd(next(ks), (L, E, E)).astype(bf)
    p["b_ca_q"] = jnp.zeros((L, 1, E), jnp.float32)
    p["w_ca_kv"] = rnd(next(ks), (L, E, 2 * E)).astype(bf)
    p["b_ca_kv"] = jnp.zeros((L, 1, 2 * E), jnp.float32)
    p["w_o"] = rnd(next(ks), (L, 2, E, E)).astype(bf)      # [self-attn, cross-attn] out-proj
    p["b_o"] = jnp.zeros((L, 2, E), jnp.float32)
    p["ln_g"] = jnp.ones((L, 3, E), jnp.float32)
    p["ln_b"] = jnp.zeros((L, 3, E), jnp.float32)
    p["ff_w1"] = rnd(next(ks), (L, E, F)).astype(bf)
    p["ff_b1"] = jnp.zeros((L, 1, F), jnp.float32)
    p["ff_w2"] = rnd(next(ks), (L, F, E)).astype(bf)
    p["ff_b2"] = jnp.zeros((L, 1, E), jnp.float32)
    # final LN + head
    p["lnf_g"] = jnp.ones((1, E), jnp.float32)
    p["lnf_b"] = jnp.zeros((1, E), jnp.float32)
    p["head_w"] = rnd(next(ks), (E, A)).astype(bf)
    p["head_b"] = jnp.zeros((1, A), jnp.float32)
    return p


# ----------------------------------------------------------------------------
# Forward pass (mirrors TrajPredictPolicy.forward, eval mode / dropout = identity)
# ----------------------------------------------------------------------------

def _sinusoidal_time_emb(timesteps, dim):
    half = dim // 2
    emb = math.log(10000.0) / (half - 1)
    freqs = jnp.exp(jnp.arange(half, dtype=jnp.float32) * -emb)
    ang = timesteps.astype(jnp.float32)[:, None] * freqs[None, :]
    return jnp.concatenate([jnp.sin(ang), jnp.cos(ang)], axis=-1)        # (B, dim)


def _build_masks(T, T_cond):
    neg = jnp.float32(-1e9)  # additive "-inf"; exp() underflows to exactly 0
    i = jnp.arange(T)[:, None]
    j = jnp.arange(T)[None, :]
    causal = jnp.where(j <= i, 0.0, neg).astype(jnp.float32)             # (T, T)
    s = jnp.arange(T_cond)[None, :]
    # matches diffusion_policy TransformerForDiffusion memory_mask: t >= (s - 1)
    mem_mask = jnp.where(i >= (s - 1), 0.0, neg).astype(jnp.float32)     # (T, T_cond)
    return causal, mem_mask


def traj_predict_policy_forward(params, cfg, rgb_static_norm, language_tokens,
                                timesteps, noisy_actions,
                                language_embedding, obs_embeddings, patch_tokens):
    """
    rgb_static_norm : (B, S, C, H, W)   -- unused (frozen MAE stubbed)
    language_tokens : (B, 77) int       -- unused (frozen CLIP stubbed)
    timesteps       : (B,) int32 diffusion step
    noisy_actions   : (B, horizon, action_dim)
    language_embedding : (B, 1, hidden_size)
    obs_embeddings     : (B, img_feat_dim)      (pass-through)
    patch_tokens       : (B, n_obs, img_feat_dim)
    """
    del rgb_static_norm, language_tokens  # backbones stubbed (see TODO at top)

    E = cfg["n_emb"]
    B, P, _ = patch_tokens.shape
    T = noisy_actions.shape[1]
    Tc = P + 2

    time_emb = _sinusoidal_time_emb(timesteps, E)[:, None, :]            # (B, 1, E)
    # dummy rows before/after the patch tokens (time / language slots); overwritten in-kernel
    patch_pad = jnp.pad(patch_tokens, ((0, 0), (1, 1), (0, 0)))          # (B, Tc, Dimg)

    patch_emb_pad, memory = _cond_encode(params, cfg, patch_pad, language_embedding, time_emb)
    patch_embeddings = patch_emb_pad[:, 1:P + 1, :]                      # (B, P, hidden)

    causal_mask, mem_mask = _build_masks(T, Tc)
    in_bias_pos = params["in_b"][None, None, :] + params["pos_emb"]      # (1, T, E)

    noise_pred = _decoder_trunk(params, cfg, noisy_actions, memory,
                                causal_mask, mem_mask, in_bias_pos)      # (B, T, action_dim)

    return noise_pred, language_embedding, obs_embeddings, patch_embeddings


# ----------------------------------------------------------------------------
# Demo
# ----------------------------------------------------------------------------

if __name__ == "__main__":
    # Scaled-down (structure-exact) config:
    #   hidden_size 512->32, img_feat_dim 768->48, horizon 30->8, patches 14^2->4^2,
    #   n_emb 768->64, n_head 12->4, n_layer 12->2.
    cfg = dict(
        action_dim=2,
        horizon=8,
        n_obs=16,            # patch tokens (patch_grid 4x4)
        hidden_size=32,      # cond_dim for the diffusion transformer
        img_feat_dim=48,     # MAE feature dim stand-in
        n_emb=64,
        n_head=4,
        n_layer=2,
    )

    key = jax.random.PRNGKey(0)
    kp, k1, k2, k3, k4, k5 = jax.random.split(key, 6)
    params = init_params(kp, cfg)

    B = 2
    rgb_static_norm = jax.random.normal(k1, (B, 1, 3, 32, 32), jnp.float32)   # NCHW (unused)
    language_tokens = jnp.zeros((B, 77), jnp.int32)                           # (unused)
    patch_tokens = jax.random.normal(k2, (B, cfg["n_obs"], cfg["img_feat_dim"]), jnp.float32)
    language_embedding = jax.random.normal(k3, (B, 1, cfg["hidden_size"]), jnp.float32)
    obs_embeddings = jax.random.normal(k4, (B, cfg["img_feat_dim"]), jnp.float32)
    timesteps = jnp.array([3, 17], dtype=jnp.int32)
    noisy_actions = jax.random.normal(k5, (B, cfg["horizon"], cfg["action_dim"]), jnp.float32)

    noise_pred, lang_emb, obs_emb, patch_emb = traj_predict_policy_forward(
        params, cfg, rgb_static_norm, language_tokens, timesteps, noisy_actions,
        language_embedding, obs_embeddings, patch_tokens)

    noise_pred = jax.block_until_ready(noise_pred)
    assert noise_pred.shape == (B, cfg["horizon"], cfg["action_dim"])
    assert patch_emb.shape == (B, cfg["n_obs"], cfg["hidden_size"])
    assert bool(jnp.all(jnp.isfinite(noise_pred)))
    print("KERNEL_OK")
</pallas_src>

<mosaic_0001>
module attributes {stable_mosaic.version = 11 : i64} {
  func.func @_cond_encoder_kernel(%arg0: memref<2x18x48xf32, #tpu.memory_space<vmem>>, %arg1: memref<2x1x32xf32, #tpu.memory_space<vmem>>, %arg2: memref<2x1x64xf32, #tpu.memory_space<vmem>>, %arg3: memref<1x18x64xf32, #tpu.memory_space<vmem>>, %arg4: memref<48x32xbf16, #tpu.memory_space<vmem>>, %arg5: memref<1x32xf32, #tpu.memory_space<vmem>>, %arg6: memref<32x64xbf16, #tpu.memory_space<vmem>>, %arg7: memref<1x64xf32, #tpu.memory_space<vmem>>, %arg8: memref<64x256xbf16, #tpu.memory_space<vmem>>, %arg9: memref<1x256xf32, #tpu.memory_space<vmem>>, %arg10: memref<256x64xbf16, #tpu.memory_space<vmem>>, %arg11: memref<1x64xf32, #tpu.memory_space<vmem>>, %arg12: memref<2x18x32xf32, #tpu.memory_space<vmem>>, %arg13: memref<2x18x64xf32, #tpu.memory_space<vmem>>) attributes {dimension_semantics = [], scalar_prefetch = 0 : i64, scratch_operands = 0 : i64, tpu.core_type = #tpu.core_type<tc>} {
    %c0 = arith.constant 0 : index
    %c0_0 = arith.constant 0 : index
    %c0_1 = arith.constant 0 : index
    %0 = vector.load %arg0[%c0, %c0_0, %c0_1] : memref<2x18x48xf32, #tpu.memory_space<vmem>>, vector<2x18x48xf32>
    %1 = vector.shape_cast %0 : vector<2x18x48xf32> to vector<36x48xf32>
    %2 = arith.truncf %1 : vector<36x48xf32> to vector<36x48xbf16>
    %c0_2 = arith.constant 0 : index
    %c0_3 = arith.constant 0 : index
    %3 = vector.load %arg4[%c0_2, %c0_3] : memref<48x32xbf16, #tpu.memory_space<vmem>>, vector<48x32xbf16>
    %cst = arith.constant dense<0.000000e+00> : vector<36x32xf32>
    %4 = tpu.matmul %2, %3, %cst {dimension_numbers = #tpu.dot_dimension_numbers<[1], [0], [0], [1], [0, 0, 1, 1], [], []>} : vector<36x48xbf16>, vector<48x32xbf16>, vector<36x32xf32> -> vector<36x32xf32>
    %c0_4 = arith.constant 0 : index
    %c0_5 = arith.constant 0 : index
    %5 = vector.load %arg5[%c0_4, %c0_5] : memref<1x32xf32, #tpu.memory_space<vmem>>, vector<1x32xf32>
    %6 = vector.broadcast %5 : vector<1x32xf32> to vector<36x32xf32>
    %7 = arith.addf %4, %6 : vector<36x32xf32>
    %8 = vector.shape_cast %7 : vector<36x32xf32> to vector<2x18x32xf32>
    %c0_6 = arith.constant 0 : index
    %c0_7 = arith.constant 0 : index
    %c0_8 = arith.constant 0 : index
    %9 = vector.load %arg12[%c0_6, %c0_7, %c0_8] : memref<2x18x32xf32, #tpu.memory_space<vmem>>, vector<2x18x32xf32>
    tpu.vector_store %arg12[%c0_6, %c0_7, %c0_8], %8 {strides = array<i32>} : memref<2x18x32xf32, #tpu.memory_space<vmem>>, vector<2x18x32xf32>,
    %10 = arith.truncf %7 : vector<36x32xf32> to vector<36x32xbf16>
    %c0_9 = arith.constant 0 : index
    %c0_10 = arith.constant 0 : index
    %11 = vector.load %arg6[%c0_9, %c0_10] : memref<32x64xbf16, #tpu.memory_space<vmem>>, vector<32x64xbf16>
    %cst_11 = arith.constant dense<0.000000e+00> : vector<36x64xf32>
    %12 = tpu.matmul %10, %11, %cst_11 {dimension_numbers = #tpu.dot_dimension_numbers<[1], [0], [0], [1], [0, 0, 1, 1], [], []>} : vector<36x32xbf16>, vector<32x64xbf16>, vector<36x64xf32> -> vector<36x64xf32>
    %c0_12 = arith.constant 0 : index
    %c0_13 = arith.constant 0 : index
    %13 = vector.load %arg7[%c0_12, %c0_13] : memref<1x64xf32, #tpu.memory_space<vmem>>, vector<1x64xf32>
    %14 = vector.broadcast %13 : vector<1x64xf32> to vector<36x64xf32>
    %15 = arith.addf %12, %14 : vector<36x64xf32>
    %16 = vector.shape_cast %15 : vector<36x64xf32> to vector<2x18x64xf32>
    %c0_14 = arith.constant 0 : index
    %c0_15 = arith.constant 0 : index
    %c0_16 = arith.constant 0 : index
    %17 = vector.load %arg1[%c0_14, %c0_15, %c0_16] : memref<2x1x32xf32, #tpu.memory_space<vmem>>, vector<2x1x32xf32>
    %18 = vector.shape_cast %17 : vector<2x1x32xf32> to vector<2x32xf32>
    %19 = arith.truncf %18 : vector<2x32xf32> to vector<2x32xbf16>
    %c0_17 = arith.constant 0 : index
    %c0_18 = arith.constant 0 : index
    %20 = vector.load %arg6[%c0_17, %c0_18] : memref<32x64xbf16, #tpu.memory_space<vmem>>, vector<32x64xbf16>
    %cst_19 = arith.constant dense<0.000000e+00> : vector<2x64xf32>
    %21 = tpu.matmul %19, %20, %cst_19 {dimension_numbers = #tpu.dot_dimension_numbers<[1], [0], [0], [1], [0, 0, 1, 1], [], []>} : vector<2x32xbf16>, vector<32x64xbf16>, vector<2x64xf32> -> vector<2x64xf32>
    %c0_20 = arith.constant 0 : index
    %c0_21 = arith.constant 0 : index
    %22 = vector.load %arg7[%c0_20, %c0_21] : memref<1x64xf32, #tpu.memory_space<vmem>>, vector<1x64xf32>
    %23 = vector.broadcast %22 : vector<1x64xf32> to vector<2x64xf32>
    %24 = arith.addf %21, %23 : vector<2x64xf32>
    %25 = tpu.iota {dimensions = array<i32: 1>} : vector<2x18x1xi32>
    %c0_i32 = arith.constant 0 : i32
    %26 = vector.broadcast %c0_i32 : i32 to vector<2x18x1xi32>
    %27 = arith.cmpi eq, %25, %26 : vector<2x18x1xi32>
    %c0_22 = arith.constant 0 : index
    %c0_23 = arith.constant 0 : index
    %c0_24 = arith.constant 0 : index
    %28 = vector.load %arg2[%c0_22, %c0_23, %c0_24] : memref<2x1x64xf32, #tpu.memory_space<vmem>>, vector<2x1x64xf32>
    %c17_i32 = arith.constant 17 : i32
    %29 = vector.broadcast %c17_i32 : i32 to vector<2x18x1xi32>
    %30 = arith.cmpi eq, %25, %29 : vector<2x18x1xi32>
    %31 = vector.shape_cast %24 : vector<2x64xf32> to vector<2x1x64xf32>
    %32 = vector.shape_cast %30 : vector<2x18x1xi1> to vector<2x18x1xi1>
    %33 = vector.broadcast %32 : vector<2x18x1xi1> to vector<2x18x64xi1>
    %34 = vector.shape_cast %31 : vector<2x1x64xf32> to vector<2x1x64xf32>
    %35 = vector.broadcast %34 : vector<2x1x64xf32> to vector<2x18x64xf32>
    %36 = arith.select %33, %35, %16 : vector<2x18x64xi1>, vector<2x18x64xf32>
    %37 = vector.shape_cast %27 : vector<2x18x1xi1> to vector<2x18x1xi1>
    %38 = vector.broadcast %37 : vector<2x18x1xi1> to vector<2x18x64xi1>
    %39 = vector.shape_cast %28 : vector<2x1x64xf32> to vector<2x1x64xf32>
    %40 = vector.broadcast %39 : vector<2x1x64xf32> to vector<2x18x64xf32>
    %41 = arith.select %38, %40, %36 : vector<2x18x64xi1>, vector<2x18x64xf32>
    %c0_25 = arith.constant 0 : index
    %c0_26 = arith.constant 0 : index
    %c0_27 = arith.constant 0 : index
    %42 = vector.load %arg3[%c0_25, %c0_26, %c0_27] : memref<1x18x64xf32, #tpu.memory_space<vmem>>, vector<1x18x64xf32>
    %43 = vector.broadcast %42 : vector<1x18x64xf32> to vector<2x18x64xf32>
    %44 = arith.addf %41, %43 : vector<2x18x64xf32>
    %45 = vector.shape_cast %44 : vector<2x18x64xf32> to vector<36x64xf32>
    %46 = arith.truncf %45 : vector<36x64xf32> to vector<36x64xbf16>
    %c0_28 = arith.constant 0 : index
    %c0_29 = arith.constant 0 : index
    %47 = vector.load %arg8[%c0_28, %c0_29] : memref<64x256xbf16, #tpu.memory_space<vmem>>, vector<64x256xbf16>
    %cst_30 = arith.constant dense<0.000000e+00> : vector<36x256xf32>
    %48 = tpu.matmul %46, %47, %cst_30 {dimension_numbers = #tpu.dot_dimension_numbers<[1], [0], [0], [1], [0, 0, 1, 1], [], []>} : vector<36x64xbf16>, vector<64x256xbf16>, vector<36x256xf32> -> vector<36x256xf32>
    %c0_31 = arith.constant 0 : index
    %c0_32 = arith.constant 0 : index
    %49 = vector.load %arg9[%c0_31, %c0_32] : memref<1x256xf32, #tpu.memory_space<vmem>>, vector<1x256xf32>
    %50 = vector.broadcast %49 : vector<1x256xf32> to vector<36x256xf32>
    %51 = arith.addf %48, %50 : vector<36x256xf32>
    %cst_33 = arith.constant 0.000000e+00 : f32
    %52 = vector.broadcast %cst_33 : f32 to vector<36x256xf32>
    %53 = arith.maximumf %51, %52 : vector<36x256xf32>
    %54 = math.absf %51 : vector<36x256xf32>
    %cst_34 = arith.constant 0.000000e+00 : f32
    %55 = vector.broadcast %cst_34 : f32 to vector<36x256xf32>
    %56 = arith.subf %55, %54 : vector<36x256xf32>
    %57 = math.exp %56 : vector<36x256xf32>
    %cst_35 = arith.constant 1.000000e+00 : f32
    %58 = vector.broadcast %cst_35 : f32 to vector<36x256xf32>
    %59 = arith.addf %58, %57 : vector<36x256xf32>
    %60 = math.log %59 : vector<36x256xf32>
    %61 = arith.addf %53, %60 : vector<36x256xf32>
    %62 = math.tanh %61 : vector<36x256xf32>
    %63 = arith.mulf %51, %62 : vector<36x256xf32>
    %64 = arith.truncf %63 : vector<36x256xf32> to vector<36x256xbf16>
    %c0_36 = arith.constant 0 : index
    %c0_37 = arith.constant 0 : index
    %65 = vector.load %arg10[%c0_36, %c0_37] : memref<256x64xbf16, #tpu.memory_space<vmem>>, vector<256x64xbf16>
    %cst_38 = arith.constant dense<0.000000e+00> : vector<36x64xf32>
    %66 = tpu.matmul %64, %65, %cst_38 {dimension_numbers = #tpu.dot_dimension_numbers<[1], [0], [0], [1], [0, 0, 1, 1], [], []>} : vector<36x256xbf16>, vector<256x64xbf16>, vector<36x64xf32> -> vector<36x64xf32>
    %c0_39 = arith.constant 0 : index
    %c0_40 = arith.constant 0 : index
    %67 = vector.load %arg11[%c0_39, %c0_40] : memref<1x64xf32, #tpu.memory_space<vmem>>, vector<1x64xf32>
    %68 = vector.broadcast %67 : vector<1x64xf32> to vector<36x64xf32>
    %69 = arith.addf %66, %68 : vector<36x64xf32>
    %70 = vector.shape_cast %69 : vector<36x64xf32> to vector<2x18x64xf32>
    %c0_41 = arith.constant 0 : index
    %c0_42 = arith.constant 0 : index
    %c0_43 = arith.constant 0 : index
    %71 = vector.load %arg13[%c0_41, %c0_42, %c0_43] : memref<2x18x64xf32, #tpu.memory_space<vmem>>, vector<2x18x64xf32>
    tpu.vector_store %arg13[%c0_41, %c0_42, %c0_43], %70 {strides = array<i32>} : memref<2x18x64xf32, #tpu.memory_space<vmem>>, vector<2x18x64xf32>,
    return
  }
}

</mosaic_0001>

<bundles_post_ra>
// kernel: tpu_custom_call.1
= control target key start
LH: loop header
LB: loop body
LE: loop exit
PB: predicated region body
PF: predicated region fallthrough
CT: control target
= control target key end

     0   :  { %v60_v0 = vlaneseq  ;;  %v1937_v1 = vmov 0.0   ;;  %vm1938_vm0 = vmmov 0   ;;  %v1939_v3 = vmov 1983009808   ;;  %s2426_s4 = inlined_call_operand.vmem [shape: bf16[48,32], index: 4, kind: input, shape index: {}]   ;;  %s2427_s0 = inlined_call_operand.vmem [shape: f32[2,18,48], index: 0, kind: input, shape index: {}]   ;;  %s2428_s6 = inlined_call_operand.vmem [shape: bf16[32,64], index: 6, kind: input, shape index: {}]   ;;  %s2429_s5 = inlined_call_operand.vmem [shape: f32[1,32], index: 5, kind: input, shape index: {}]   ;;  %s2430_s1 = inlined_call_operand.vmem [shape: f32[2,1,32], index: 1, kind: input, shape index: {}]   ;;  %s2431_s12 = inlined_call_operand.vmem [shape: f32[2,18,32], index: 12, kind: output, shape index: {0}]   ;;  %s2432_s8 = inlined_call_operand.vmem [shape: bf16[64,256], index: 8, kind: input, shape index: {}]   ;;  %s2433_s7 = inlined_call_operand.vmem [shape: f32[1,64], index: 7, kind: input, shape index: {}]   ;;  %s2434_s2 = inlined_call_operand.vmem [shape: f32[2,1,64], index: 2, kind: input, shape index: {}]   ;;  %s2435_s3 = inlined_call_operand.vmem [shape: f32[1,18,64], index: 3, kind: input, shape index: {}]   ;;  %s2436_s10 = inlined_call_operand.vmem [shape: bf16[256,64], index: 10, kind: input, shape index: {}]   ;;  %s2437_s9 = inlined_call_operand.vmem [shape: f32[1,256], index: 9, kind: input, shape index: {}]   ;;  %s2438_s11 = inlined_call_operand.vmem [shape: f32[1,64], index: 11, kind: input, shape index: {}]   ;;  %s2439_s13 = inlined_call_operand.vmem [shape: f32[2,18,64], index: 13, kind: output, shape index: {1}]  }
   0x1   :  { %1789 = vmatprep.subr.bf16.mxu0 %v1937_v1  ;;  %v1840_v2 = vld [vmem:[%s2426_s4 + $0x10] sm:$0xff]   ;;  %1795 = vmatprep.mubr.msk.bf16.mxu0 %vm1938_vm0, %v1937_v1  ;;  %v58_v4 = vunpack.c.l.s4 %v1939_v3  ;;  %v1841_v6 = vld [vmem:[%s2426_s4 + $0x8] sm:$0xff]   ;;  %v44_v8 = vld [vmem:[%s2427_s0] sm:$0xff]  ;;  %vm253_vm1 = vcmask 392192   ;;  %vm488_vm2 = vcmask 261120   ;;  %vm491_vm3 = vcmask 254976  }
   0x2   :  { %v2018_v5 = vshrl.u32 %v60_v0, 7  ;;  %1831 = vmatprep.subr.bf16.mxu1 %v1937_v1  ;;  %1819 = vmatprep.mubr.msk.bf16.mxu1 %vm1938_vm0, %v1937_v1  ;;  %v45_v9 = vld [vmem:[%s2427_s0 + $0x8] sm:$0xff]  ;;  %v56_v10 = vcombine.high %v44_v8, %v44_v8  ;;  %v1695_v13 = vld.sshfl [vmem:[%s2427_s0 + $0x10] sm:$0x3 pattern:$0x76325410] }
   0x3   :  { %1790 = vmatpush3.bf16.msra.mxu0 %v1840_v2  ;;  %v59_v7 = vunpack.c.0.s8 %v58_v4  ;;  %v73_v12 = vcombine.high %v45_v9, %v45_v9  ;;  %v47_v14 = vld [vmem:[%s2427_s0 + $0x18] sm:$0xff]  ;;  %v48_v15 = vld [vmem:[%s2427_s0 + $0x20] sm:$0xff]  ;;  %v2055_v23 = vld [vmem:[%s2428_s6 + $0x8] sm:$0xff]   ;;  %vm677_vm4 = vcmask 1041409   ;;  %vm1133_vm7 = vcmask 523264  }
   0x4   :  { %1791 = vmatprep.subr.bf16.mxu0 %v1937_v1  ;;  %v1842_v16 = vld [vmem:[%s2426_s4] sm:$0xff]   ;;  %v97_v17 = vcombine.high %v47_v14, %v47_v14  ;;  %v114_v18 = vcombine.high %v48_v15, %v48_v15  ;;  %1833 = vmatpush3.bf16.msra.mxu1 %v2055_v23  ;;  %v1696_v58 = vld.sshfl [vmem:[%s2427_s0 + $0x28] sm:$0x3 pattern:$0x76325410]  ;;  %vm727_vm5 = vcmp.eq.s32.totalorder %v2018_v5, 0 }
   0x5   :  { %v2034_v11 = vsub.s32 %v59_v7, %v2018_v5  ;;  %1832 = vmatprep.subr.bf16.mxu1 %v1937_v1  ;;  %v2067_v40 = vld [vmem:[%s2428_s6] sm:$0xff]   ;;  %vm1682_vm8 = vcmask 517120  }
   0x6   :  { %v1697_v63 = vld [vmem:[%s2429_s5] ss:$0 sm:$0xff] }
   0x7   :  { %1792 = vmatpush3.bf16.msra.mxu0 %v1841_v6  ;;  %v63_v19 = vrot.slane %v44_v8, %v2034_v11  ;;  %v70_v20 = vrot.slane %v56_v10, %v2034_v11  ;;  %v80_v21 = vrot.slane %v45_v9, %v2034_v11  ;;  %v87_v22 = vrot.slane %v73_v12, %v2034_v11 }
   0x8   :  { %1793 = vmatprep.subr.bf16.mxu0 %v1937_v1  ;;  %v104_v24 = vrot.slane %v47_v14, %v2034_v11  ;;  %v111_v25 = vrot.slane %v97_v17, %v2034_v11  ;;  %v121_v26 = vrot.slane %v48_v15, %v2034_v11  ;;  %v128_v27 = vrot.slane %v114_v18, %v2034_v11 }
   0x9   :  { %v71_v28 = vcombine.high %v63_v19, %v63_v19  ;;  %v72_v29 = vcombine.high %v70_v20, %v70_v20  ;;  %v88_v30 = vcombine.high %v80_v21, %v80_v21  ;;  %v89_v31 = vcombine.high %v87_v22, %v87_v22  ;;  %1834 = vmatpush3.bf16.msra.mxu1 %v2067_v40 }
   0xa   :  { %v112_v32 = vcombine.high %v104_v24, %v104_v24  ;;  %v113_v33 = vcombine.high %v111_v25, %v111_v25  ;;  %v129_v34 = vcombine.high %v121_v26, %v121_v26  ;;  %v172_v35 = vcombine.low %v1695_v13, %v104_v24  ;;  %1823 = vmatprep.subr.bf16.mxu1 %v1937_v1  ;;  %v669_v13 = vld [vmem:[%s2430_s1 + $0x1] sm:$0x1]  ;;  %v668_v24 = vld [vmem:[%s2430_s1] sm:$0x1] }
   0xb   :  { %1794 = vmatpush3.bf16.msra.mxu0 %v1842_v16  ;;  %v138_v36 = vcombine.low %v63_v19, %v71_v28  ;;  %v139_v37 = vcombine.low %v70_v20, %v72_v29  ;;  %v155_v38 = vcombine.low %v80_v21, %v88_v30  ;;  %v156_v39 = vcombine.low %v87_v22, %v89_v31 }
   0xc   :  { %v173_v41 = vcombine.low %v112_v32, %v111_v25  ;;  %v189_v42 = vcombine.low %v113_v33, %v121_v26  ;;  %v190_v43 = vcombine.low %v129_v34, %v128_v27  ;;  %1807 = vmatprep.subr.bf16.mxu0 %v1937_v1  ;;  %v180_v48 = vrot.slane %v172_v35, %v2034_v11 }
   0xd   :  { %v146_v44 = vrot.slane %v138_v36, %v2034_v11  ;;  %v153_v45 = vrot.slane %v139_v37, %v2034_v11  ;;  %v163_v46 = vrot.slane %v155_v38, %v2034_v11  ;;  %v170_v47 = vrot.slane %v156_v39, %v2034_v11 }
   0xe   :  { %v187_v49 = vrot.slane %v173_v41, %v2034_v11  ;;  %v197_v52 = vrot.slane %v189_v42, %v2034_v11  ;;  %v204_v53 = vrot.slane %v190_v43, %v2034_v11  ;;  %v130_v57 = vcombine.high %v128_v27, %v128_v27 }
   0xf   :  { %v154_v50 = vcombine.low %v146_v44, %v153_v45  ;;  %v171_v51 = vcombine.low %v163_v46, %v170_v47  ;;  %v671_v25 = vpack.c.bf16 %v669_v13, %v669_v13  ;;  %v670_v35 = vpack.c.bf16 %v668_v24, %v668_v24  ;;  %v2187_v24 = vld [vmem:[%s2433_s7] ss:$0 sm:$0xff] }
  0x10   :  { %v188_v55 = vcombine.low %v180_v48, %v187_v49  ;;  %v205_v56 = vcombine.low %v197_v52, %v204_v53  ;;  %v206_v60 = vcombine.low %v130_v57, %v1696_v58 }
  0x11   :  { %v219_v54 = vpack.c.bf16 %v171_v51, %v154_v50  ;;  %v675_v39 = vunpack.c.l.b16 %v671_v25  ;;  %v674_v53 = vunpack.c.l.b16 %v670_v35  ;;  %v1941_v35 = vmov 1966171168  }
  0x12   :  { %v220_v59 = vpack.c.bf16 %v205_v56, %v188_v55  ;;  %v213_v61 = vrot.slane %v206_v60, %v2034_v11 }
  0x13   :  { %1796 = vmatmul.mubr.msk.bf16.vlgmr.msra.gmra.mxu0 %vm253_vm1, %v219_v54 }
  0x14   :  { %1799 = vmatprep.mubr.msk.bf16.mxu0 %vm1938_vm0, %v1937_v1  ;;  %1808 = vmatpush3.bf16.msra.mxu0 %v2055_v23  ;;  %v221_v62 = vpack.c.bf16 %v213_v61, %v213_v61  ;;  %v676_v61 = vrot.slane %v675_v39, 7 }
  0x15   :  { %1809 = vmatprep.subr.bf16.mxu0 %v1937_v1 }
  0x18   :  { %1810 = vmatpush3.bf16.msra.mxu0 %v2067_v40 }
  0x1b   :  { %1800 = vmatmul.mubr.msk.bf16.gmra.mxu0 %vm253_vm1, %v220_v59 }
  0x1c   :  { %1803 = vmatprep.mubr.msk.bf16.mxu0 %vm1938_vm0, %v1937_v1 }
  0x23   :  { %1804 = vmatmul.mubr.msk.bf16.gmra.mxu0 %vm253_vm1, %v221_v62 }
  0x24   :  { %1811 = vmatprep.mubr.msk.bf16.mxu0 %vm1938_vm0, %v1937_v1 }
  0xd3   :  { %v297_v0 = vpop.f32.mrf.mxu0 }
  0xd4   :  { %v298_v2 = vadd.f32 %v1697_v63, %v297_v0 }
  0xd5   :  { %v1797_v3 = vpop.f32.mrf.mxu0 }
  0xd6   :  { %v324_v4 = vcombine.high %v298_v2, %v298_v2  ;;  %v331_v6 = vrot.slane %v298_v2, %v2034_v11 }
  0xd7   :  { %v300_v7 = vpop.f32.mrf.mxu0 }
  0xd8   :  { %v338_v8 = vrot.slane %v324_v4, %v2034_v11  ;;  %v339_v9 = vcombine.high %v331_v6, %v331_v6  ;;  %v301_v10 = vadd.f32 %v1697_v63, %v300_v7 }
  0xd9   :  { %v1798_v12 = vpop.f32.mrf.mxu0 }
  0xda   :  { %v340_v14 = vcombine.high %v338_v8, %v338_v8  ;;  %v400_v15 = vcombine.low %v331_v6, %v339_v9  ;;  %v341_v16 = vcombine.high %v301_v10, %v301_v10  ;;  %v348_v17 = vrot.slane %v301_v10, %v2034_v11 }
  0xdb   :  { %v496_v18 = vpack.c.bf16 %v301_v10, %v298_v2  ;;  %v305_v19 = vpop.f32.mrf.mxu0  ;;  %v678_v10 = vsel %vm677_vm4, %v676_v61, %v674_v53  ;;  %v892_v61 = vld [vmem:[%s2435_s3] sm:$0xff] }
  0xdc   :  { %v401_v20 = vcombine.low %v338_v8, %v340_v14  ;;  %v355_v21 = vrot.slane %v341_v16, %v2034_v11  ;;  %v356_v22 = vcombine.high %v348_v17, %v348_v17  ;;  %v306_v26 = vadd.f32 %v1697_v63, %v305_v19  ;;  %v1849_v16 = vld [vmem:[%s2432_s8 + $0x30] ss:$8 sps:$4 sm:$0xff]  }
  0xdd   :  { %1812 = vmatmul.mubr.msk.bf16.vlgmr.msra.gmra.mxu0 %vm488_vm2, %v496_v18  ;;  %v1801_v27 = vpop.f32.mrf.mxu0  ;;  %v408_v28 = vrot.slane %v400_v15, %v2034_v11  ;;  %v1857_v18 = vld [vmem:[%s2432_s8 + $0x14] ss:$8 sps:$4 sm:$0xff]   ;;  %v1855_v19 = vld [vmem:[%s2432_s8 + $0x10] ss:$8 sps:$4 sm:$0xff]  }
  0xde   :  { %v415_v29 = vrot.slane %v401_v20, %v2034_v11  ;;  %v357_v30 = vcombine.high %v355_v21, %v355_v21  ;;  %v417_v31 = vcombine.low %v348_v17, %v356_v22  ;;  %1815 = vmatprep.mubr.msk.bf16.mxu0 %vm1938_vm0, %v1937_v1  ;;  %v358_v32 = vcombine.high %v306_v26, %v306_v26  ;;  %v1852_v17 = vld [vmem:[%s2432_s8 + $0x20] ss:$8 sps:$4 sm:$0xff]   ;;  %v1860_v20 = vld [vmem:[%s2432_s8 + $0x4] ss:$8 sps:$4 sm:$0xff]  }
  0xdf   :  { %v365_v33 = vrot.slane %v306_v26, %v2034_v11  ;;  %v308_v34 = vpop.f32.mrf.mxu0  ;;  %v1940_v22 = vmov 0  }
  0xe0   :  { %v416_v36 = vcombine.low %v408_v28, %v415_v29  ;;  %v418_v37 = vcombine.low %v355_v21, %v357_v30  ;;  %v309_v38 = vadd.f32 %v1697_v63, %v308_v34  ;;  %v425_v41 = vrot.slane %v417_v31, %v2034_v11  ;;  %v1858_v21 = vld [vmem:[%s2432_s8] ss:$8 sps:$4 sm:$0xff]  }
  0xe1   :  { %v372_v42 = vrot.slane %v358_v32, %v2034_v11  ;;  %v373_v43 = vcombine.high %v365_v33, %v365_v33  ;;  %v440_v44 = vrot.slane %v365_v33, %v2034_v11  ;;  %v1802_v45 = vpop.f32.mrf.mxu0 }
  0xe2   :  { %489 = vst.msk [vmem:[%s2431_s12] sm:$0xff] %vm488_vm2, %v416_v36  ;;  %v432_v46 = vrot.slane %v418_v37, %v2034_v11  ;;  %v375_v47 = vcombine.high %v309_v38, %v309_v38  ;;  %v382_v48 = vrot.slane %v309_v38, %v2034_v11  ;;  %v497_v49 = vpack.c.bf16 %v309_v38, %v306_v26 }
  0xe3   :  { %v441_v50 = vcombine.low %v373_v43, %v372_v42  ;;  %492 = vst.msk [vmem:[%s2431_s12 + $0x10] sm:$0x3] %vm491_vm3, %v440_v44  ;;  %v374_v51 = vcombine.high %v372_v42, %v372_v42  ;;  %v313_v52 = vpop.f32.mrf.mxu0  ;;  %v737_v36 = vunpack.c.l.s4 %v1941_v35 }
  0xe4   :  { %v433_v54 = vcombine.low %v425_v41, %v432_v46  ;;  %v389_v55 = vrot.slane %v375_v47, %v2034_v11  ;;  %v390_v56 = vcombine.high %v382_v48, %v382_v48  ;;  %v314_v57 = vadd.f32 %v1697_v63, %v313_v52 }
  0xe5   :  { %v449_v58 = vrot.slane %v441_v50, %v2034_v11  ;;  %v442_v59 = vcombine.low %v374_v51, %v382_v48  ;;  %1816 = vmatmul.mubr.msk.bf16.gmra.mxu0 %vm488_vm2, %v497_v49  ;;  %v1805_v60 = vpop.f32.mrf.mxu0  ;;  %v738_v48 = vunpack.c.0.s8 %v737_v36 }
  0xe6   :  { %490 = vst.msk [vmem:[%s2431_s12 + $0x8] sm:$0xff] %vm488_vm2, %v433_v54  ;;  %v458_v62 = vcombine.low %v390_v56, %v389_v55  ;;  %v391_v0 = vcombine.high %v389_v55, %v389_v55  ;;  %v398_v2 = vrot.slane %v314_v57, %v2034_v11  ;;  %v498_v3 = vpack.c.bf16 %v314_v57, %v314_v57  ;;  %v1711_v54 = vld [vmem:[%s2434_s2] ss:$0 sm:$0xff] }
  0xe7   :  { %v456_v63 = vrot.slane %v442_v59, %v2034_v11  ;;  %v316_v4 = vpop.f32.mrf.mxu0  ;;  %1175 = vmatprep.mubr.bf16.mxu0 %v1940_v22 }
  0xe8   :  { %v399_v6 = vcombine.high %v398_v2, %v398_v2  ;;  %v459_v7 = vcombine.low %v391_v0, %v398_v2  ;;  %1820 = vmatmul.mubr.msk.bf16.vlgmr.msra.gmra.mxu1 %vm488_vm2, %v498_v3  ;;  %v466_v12 = vrot.slane %v458_v62, %v2034_v11 }
  0xe9   :  { %v457_v8 = vcombine.low %v449_v58, %v456_v63  ;;  %v1806_v9 = vpop.f32.mrf.mxu0  ;;  %1824 = vmatpush3.bf16.msra.mxu1 %v2055_v23  ;;  %1827 = vmatprep.mubr.msk.bf16.mxu1 %vm1938_vm0, %v1937_v1  ;;  %v679_v23 = vpack.c.b16 %v678_v10, %v678_v10  ;;  %v2206_v58 = vadd.s32 16, %v2018_v5 }
  0xea   :  { %v473_v13 = vrot.slane %v459_v7, %v2034_v11  ;;  %v481_v14 = vrot.slane %v399_v6, %v2034_v11  ;;  %1825 = vmatprep.subr.bf16.mxu1 %v1937_v1  ;;  %v1851_v1 = vld [vmem:[%s2432_s8 + $0x34] ss:$8 sps:$4 sm:$0xff]   ;;  %v741_v7 = vsub.s32 %v738_v48, %v2018_v5 }
  0xeb   :  { %493 = vst.msk [vmem:[%s2431_s12 + $0x18] sm:$0xff] %vm488_vm2, %v457_v8  ;;  %1151 = vmatprep.subr.bf16.mxu0 %v1851_v1  ;;  %vm734_vm6 = vcmp.eq.s32.totalorder %v2206_v58, 17 }
  0xec   :  { %v474_v15 = vcombine.low %v466_v12, %v473_v13  ;;  %495 = vst.msk [vmem:[%s2431_s12 + $0x28] sm:$0x3] %vm491_vm3, %v481_v14  ;;  %1152 = vmatpush1.bf16.msra.mxu0 %v1849_v16  ;;  %v893_v14 = vld [vmem:[%s2435_s3 + $0x8] sm:$0xff]  ;;  %v2226_v16 = vsub.s32 0, %v2018_v5 }
  0xed   :  { %1826 = vmatpush3.bf16.msra.mxu1 %v2067_v40  ;;  %v1854_v40 = vld [vmem:[%s2432_s8 + $0x24] ss:$8 sps:$4 sm:$0xff]  }
  0xee   :  { %494 = vst.msk [vmem:[%s2431_s12 + $0x20] sm:$0xff] %vm488_vm2, %v474_v15  ;;  %1153 = vmatprep.subr.bf16.mxu0 %v1854_v40 }
  0xf0   :  { %1828 = vmatmul.mubr.msk.bf16.vlgmr.msra.gmra.mxu1 %vm488_vm2, %v679_v23  ;;  %1154 = vmatpush1.bf16.msra.mxu0 %v1852_v17 }
  0xf1   :  { %1155 = vmatprep.subr.bf16.mxu0 %v1857_v18 }
  0xf4   :  { %1156 = vmatpush1.bf16.msra.mxu0 %v1855_v19 }
  0xf5   :  { %1157 = vmatprep.subr.bf16.mxu0 %v1860_v20 }
  0xf8   :  { %1158 = vmatpush1.bf16.msra.mxu0 %v1858_v21 }
 0x19d   :  { %v565_v25 = vpop.f32.mrf.mxu0 }
 0x19e   :  { %v566_v26 = vadd.f32 %v2187_v24, %v565_v25 }
 0x19f   :  { %v1813_v27 = vpop.f32.mrf.mxu0 }
 0x1a0   :  { %v592_v28 = vcombine.high %v566_v26, %v566_v26  ;;  %v599_v29 = vrot.slane %v566_v26, %v2034_v11 }
 0x1a1   :  { %v568_v30 = vpop.f32.mrf.mxu0 }
 0x1a2   :  { %v606_v31 = vrot.slane %v592_v28, %v2034_v11  ;;  %v607_v32 = vcombine.high %v599_v29, %v599_v29  ;;  %v569_v33 = vadd.f32 %v2187_v24, %v568_v30 }
 0x1a3   :  { %v1814_v34 = vpop.f32.mrf.mxu0 }
 0x1a4   :  { %v608_v37 = vcombine.high %v606_v31, %v606_v31  ;;  %v774_v38 = vcombine.low %v599_v29, %v607_v32  ;;  %v609_v39 = vcombine.high %v569_v33, %v569_v33  ;;  %v616_v41 = vrot.slane %v569_v33, %v2034_v11 }
 0x1a5   :  { %v573_v42 = vpop.f32.mrf.mxu0 }
 0x1a6   :  { %v775_v43 = vcombine.low %v606_v31, %v608_v37  ;;  %v623_v44 = vrot.slane %v609_v39, %v2034_v11  ;;  %v624_v45 = vcombine.high %v616_v41, %v616_v41  ;;  %v574_v46 = vadd.f32 %v2187_v24, %v573_v42  ;;  %v1712_v39 = vld [vmem:[%s2434_s2 + $0x1] ss:$0 sm:$0xff] }
 0x1a7   :  { %v1817_v47 = vpop.f32.mrf.mxu0  ;;  %v782_v49 = vrot.slane %v774_v38, %v2034_v11 }
 0x1a8   :  { %v789_v50 = vrot.slane %v775_v43, %v2034_v11  ;;  %v625_v51 = vcombine.high %v623_v44, %v623_v44  ;;  %v791_v52 = vcombine.low %v616_v41, %v624_v45  ;;  %v581_v53 = vpop.f32.mrf.mxu1  ;;  %v626_v55 = vcombine.high %v574_v46, %v574_v46 }
 0x1a9   :  { %v2203_v56 = vrot.slane %v574_v46, %v2034_v11  ;;  %v576_v57 = vpop.f32.mrf.mxu0  ;;  %v582_v0 = vadd.f32 %v2187_v24, %v581_v53 }
 0x1aa   :  { %v790_v59 = vcombine.low %v782_v49, %v789_v50  ;;  %v792_v60 = vcombine.low %v623_v44, %v625_v51  ;;  %v577_v62 = vadd.f32 %v2187_v24, %v576_v57  ;;  %v1821_v2 = vpop.f32.mrf.mxu1  ;;  %v799_v3 = vrot.slane %v791_v52, %v2034_v11 }
 0x1ab   :  { %v640_v63 = vrot.slane %v626_v55, %v2034_v11  ;;  %v641_v4 = vcombine.high %v2203_v56, %v2203_v56  ;;  %v1818_v6 = vpop.f32.mrf.mxu0  ;;  %v666_v19 = vrot.slane %v582_v0, %v2034_v11  ;;  %v814_v26 = vrot.slane %v2203_v56, %v2034_v11 }
 0x1ac   :  { %v886_v8 = vsel %vm727_vm5, %v1711_v54, %v790_v59  ;;  %v806_v9 = vrot.slane %v792_v60, %v2034_v11  ;;  %v643_v10 = vcombine.high %v577_v62, %v577_v62  ;;  %v650_v12 = vrot.slane %v577_v62, %v2034_v11  ;;  %v584_v13 = vpop.f32.mrf.mxu1 }
 0x1ad   :  { %v895_v15 = vadd.f32 %v892_v61, %v886_v8  ;;  %v815_v23 = vcombine.low %v641_v4, %v640_v63  ;;  %v642_v1 = vcombine.high %v640_v63, %v640_v63  ;;  %v667_v41 = vcombine.high %v666_v19, %v666_v19  ;;  %v894_v63 = vld [vmem:[%s2435_s3 + $0x10] sm:$0x3] }
 0x1ae   :  { %v807_v40 = vcombine.low %v799_v3, %v806_v9  ;;  %v657_v17 = vrot.slane %v643_v10, %v2034_v11  ;;  %v658_v18 = vcombine.high %v650_v12, %v650_v12  ;;  %v1822_v20 = vpop.f32.mrf.mxu1 }
 0x1af   :  { %v907_v21 = vcombine.high %v895_v15, %v895_v15  ;;  %v914_v25 = vrot.slane %v895_v15, %v2034_v11  ;;  %v816_v27 = vcombine.low %v642_v1, %v650_v12  ;;  %v823_v29 = vrot.slane %v815_v23, %v2034_v11 }
 0x1b0   :  { %v896_v28 = vadd.f32 %v893_v14, %v807_v40  ;;  %v832_v30 = vcombine.low %v658_v18, %v657_v17  ;;  %v659_v31 = vcombine.high %v657_v17, %v657_v17  ;;  %v717_v32 = vpop.f32.mrf.mxu1  ;;  %v855_v0 = vrot.slane %v667_v41, %v2034_v11 }
 0x1b1   :  { %v921_v33 = vrot.slane %v907_v21, %v2034_v11  ;;  %v922_v34 = vcombine.high %v914_v25, %v914_v25  ;;  %v830_v35 = vrot.slane %v816_v27, %v2034_v11  ;;  %v718_v36 = vadd.f32 %v2187_v24, %v717_v32 }
 0x1b2   :  { %v924_v37 = vcombine.high %v896_v28, %v896_v28  ;;  %v931_v38 = vrot.slane %v896_v28, %v2034_v11  ;;  %v833_v42 = vcombine.low %v659_v31, %v666_v19  ;;  %v1829_v43 = vpop.f32.mrf.mxu1  ;;  %v840_v46 = vrot.slane %v832_v30, %v2034_v11 }
 0x1b3   :  { %v923_v44 = vcombine.high %v921_v33, %v921_v33  ;;  %v831_v45 = vcombine.low %v823_v29, %v830_v35  ;;  %v742_v47 = vrot.slane %v718_v36, %v741_v7  ;;  %v989_v50 = vcombine.low %v914_v25, %v922_v34 }
 0x1b4   :  { %v938_v48 = vrot.slane %v924_v37, %v2034_v11  ;;  %v939_v49 = vcombine.high %v931_v38, %v931_v38  ;;  %v847_v24 = vrot.slane %v833_v42, %v2034_v11  ;;  %v720_v51 = vpop.f32.mrf.mxu1 }
 0x1b5   :  { %v990_v52 = vcombine.low %v921_v33, %v923_v44  ;;  %v889_v53 = vsel %vm727_vm5, %v1712_v39, %v831_v45  ;;  %v743_v54 = vcombine.high %v742_v47, %v742_v47  ;;  %v750_v55 = vrot.slane %v742_v47, %v741_v7  ;;  %v1862_v47 = vld [vmem:[%s2436_s10 + $0x38] sm:$0xff]   ;;  %v1868_v51 = vld [vmem:[%s2436_s10 + $0x20] sm:$0xff]  }
 0x1b6   :  { %v940_v56 = vcombine.high %v938_v48, %v938_v48  ;;  %v1006_v57 = vcombine.low %v931_v38, %v939_v49  ;;  %v898_v59 = vadd.f32 %v892_v61, %v889_v53  ;;  %v848_v60 = vcombine.low %v840_v46, %v847_v24  ;;  %v1830_v62 = vpop.f32.mrf.mxu1  ;;  %v1861_v46 = vld [vmem:[%s2436_s10 + $0x78] sm:$0xff]   ;;  %v1865_v49 = vld [vmem:[%s2436_s10 + $0x68] sm:$0xff]   ;;  %v1867_v24 = vld [vmem:[%s2436_s10 + $0x60] sm:$0xff]  }
 0x1b7   :  { %v757_v2 = vrot.slane %v743_v54, %v741_v7  ;;  %v767_v3 = vrot.slane %v750_v55, %v2226_v16  ;;  %v1004_v4 = vrot.slane %v990_v52, %v2034_v11  ;;  %v997_v10 = vrot.slane %v989_v50, %v2034_v11  ;;  %1755 = vmatprep.subr.bf16.mxu1 %v1861_v46  ;;  %v1866_v50 = vld [vmem:[%s2436_s10 + $0x28] sm:$0xff]   ;;  %v1869_v52 = vld [vmem:[%s2436_s10 + $0x58] sm:$0xff]   ;;  %v1871_v54 = vld [vmem:[%s2436_s10 + $0x50] sm:$0xff]  }
 0x1b8   :  { %v1007_v6 = vcombine.low %v938_v48, %v940_v56  ;;  %v948_v8 = vcombine.high %v898_v59, %v898_v59  ;;  %v899_v9 = vadd.f32 %v893_v14, %v848_v60  ;;  %v1014_v61 = vrot.slane %v1006_v57, %v2034_v11  ;;  %1756 = vmatpush3.bf16.msra.mxu1 %v1862_v47  ;;  %v1863_v48 = vld [vmem:[%s2436_s10 + $0x70] sm:$0xff]   ;;  %v1870_v53 = vld [vmem:[%s2436_s10 + $0x18] sm:$0xff]   ;;  %v1873_v56 = vld [vmem:[%s2436_s10 + $0x48] sm:$0xff]  }
 0x1b9   :  { %v771_v12 = vrot.slane %v757_v2, %v2226_v16  ;;  %v864_v7 = vsel %vm734_vm6, %v767_v3, %v814_v26  ;;  %v955_v13 = vrot.slane %v898_v59, %v2034_v11  ;;  %v1005_v17 = vcombine.low %v997_v10, %v1004_v4  ;;  %1757 = vmatprep.subr.bf16.mxu1 %v1863_v48  ;;  %v1872_v55 = vld [vmem:[%s2436_s10 + $0x10] sm:$0xff]   ;;  %v1874_v57 = vld [vmem:[%s2436_s10 + $0x8] sm:$0xff]   ;;  %v1875_v59 = vld [vmem:[%s2436_s10 + $0x40] sm:$0xff]  }
 0x1ba   :  { %v1021_v15 = vrot.slane %v1007_v6, %v2034_v11  ;;  %v965_v23 = vcombine.high %v899_v9, %v899_v9  ;;  %v972_v1 = vrot.slane %v899_v9, %v2034_v11  ;;  %v897_v40 = vadd.f32 %v894_v63, %v864_v7  ;;  %v1876_v60 = vld [vmem:[%s2436_s10] sm:$0xff]  }
 0x1bb   :  { %v867_v14 = vsel %vm734_vm6, %v771_v12, %v855_v0  ;;  %v962_v18 = vrot.slane %v948_v8, %v2034_v11  ;;  %v963_v19 = vcombine.high %v955_v13, %v955_v13  ;;  %v1081_v62 = vld [vmem:[%s2437_s9] sm:$0x3]  ;;  %v1089_v0 = vsub.s32 1, %v2018_v5 }
 0x1bc   :  { %v1022_v20 = vcombine.low %v1014_v61, %v1021_v15  ;;  %v979_v21 = vrot.slane %v965_v23, %v2034_v11  ;;  %v980_v25 = vcombine.high %v972_v1, %v972_v1  ;;  %v947_v26 = vrot.slane %v897_v40, %v2034_v11 }
 0x1bd   :  { %v964_v27 = vcombine.high %v962_v18, %v962_v18  ;;  %v1024_v28 = vcombine.low %v963_v19, %v962_v18  ;;  %v900_v32 = vadd.f32 %v894_v63, %v867_v14  ;;  %v1086_v2 = vrot.slane %v1081_v62, %v2226_v16 }
 0x1be   :  { %v1070_v29 = vpack.c.bf16 %v1022_v20, %v1005_v17  ;;  %v1023_v30 = vcombine.low %v947_v26, %v955_v13  ;;  %v1041_v31 = vcombine.low %v980_v25, %v979_v21  ;;  %v981_v38 = vcombine.high %v979_v21, %v979_v21 }
 0x1bf   :  { %v1040_v33 = vcombine.low %v964_v27, %v972_v1  ;;  %v1038_v34 = vrot.slane %v1024_v28, %v2034_v11  ;;  %v988_v39 = vrot.slane %v900_v32, %v2034_v11  ;;  %v1090_v3 = vrot.slane %v1081_v62, %v1089_v0 }
 0x1c0   :  { %1721 = vmatmul.mubr.msk.bf16.vlgmr.msra.gmra.mxu0 %vm1133_vm7, %v1070_v29  ;;  %v1031_v58 = vrot.slane %v1023_v30, %v2034_v11  ;;  %v1055_v35 = vrot.slane %v1041_v31, %v2034_v11 }
 0x1c1   :  { %1185 = vmatprep.mubr.bf16.mxu0 %v1940_v22  ;;  %v1048_v36 = vrot.slane %v1040_v33, %v2034_v11  ;;  %v1057_v43 = vcombine.low %v981_v38, %v988_v39 }
 0x1c2   :  { %v1039_v37 = vcombine.low %v1031_v58, %v1038_v34 }
 0x1c3   :  { %v1056_v41 = vcombine.low %v1048_v36, %v1055_v35  ;;  %v1064_v44 = vrot.slane %v1057_v43, %v2034_v11 }
 0x1c5   :  { %v1071_v42 = vpack.c.bf16 %v1056_v41, %v1039_v37  ;;  %v1072_v45 = vpack.c.bf16 %v1064_v44, %v1064_v44 }
 0x1c8   :  { %1722 = vmatmul.mubr.msk.bf16.gmra.mxu0 %vm1133_vm7, %v1071_v42 }
 0x1c9   :  { %1195 = vmatprep.mubr.bf16.mxu0 %v1940_v22  ;;  %v1864_v22 = vld [vmem:[%s2436_s10 + $0x30] sm:$0xff]  }
 0x1ca   :  { %1758 = vmatpush3.bf16.msra.mxu1 %v1864_v22 }
 0x1cb   :  { %1759 = vmatprep.subr.bf16.mxu1 %v1865_v49 }
 0x1ce   :  { %1760 = vmatpush3.bf16.msra.mxu1 %v1866_v50 }
 0x1cf   :  { %1761 = vmatprep.subr.bf16.mxu1 %v1867_v24 }
 0x1d0   :  { %1723 = vmatmul.mubr.msk.bf16.gmra.mxu0 %vm1133_vm7, %v1072_v45 }
 0x1d2   :  { %1762 = vmatpush3.bf16.msra.mxu1 %v1868_v51 }
 0x1d3   :  { %1763 = vmatprep.subr.bf16.mxu1 %v1869_v52 }
 0x1d6   :  { %1764 = vmatpush3.bf16.msra.mxu1 %v1870_v53 }
 0x1d7   :  { %1765 = vmatprep.subr.bf16.mxu1 %v1871_v54 }
 0x1da   :  { %1766 = vmatpush3.bf16.msra.mxu1 %v1872_v55 }
 0x1db   :  { %1767 = vmatprep.subr.bf16.mxu1 %v1873_v56 }
 0x1de   :  { %1768 = vmatpush3.bf16.msra.mxu1 %v1874_v57 }
 0x1df   :  { %1769 = vmatprep.subr.bf16.mxu1 %v1875_v59 }
 0x1e2   :  { %1770 = vmatpush3.bf16.msra.mxu1 %v1876_v60 }
 0x280   :  { %v1177_v63 = vpop.f32.mrf.mxu0 }
 0x281   :  { %v2330_v4 = vadd.f32 %v1177_v63, %v1086_v2 }
 0x282   :  { %v1179_v6 = vpop.f32.mrf.mxu0 }
 0x283   :  { %v1214_v8 = vand.u32 2147483647, %v2330_v4  ;;  %v2333_v9 = vadd.f32 %v1179_v6, %v1090_v3 }
 0x284   :  { %v1181_v10 = vpop.f32.mrf.mxu0 }
 0x285   :  { %v1224_v61 = vsub.f32 0.0, %v1214_v8  ;;  %v1215_v12 = vand.u32 2147483647, %v2333_v9  ;;  %v2336_v7 = vadd.f32 %v1181_v10, %v1086_v2 }
 0x286   :  { %v1183_v13 = vpop.f32.mrf.mxu0 }
 0x287   :  { %v1234_v15 = vmul.f32 1.442695, %v1224_v61  ;;  %v1225_v5 = vsub.f32 0.0, %v1215_v12  ;;  %v1216_v16 = vand.u32 2147483647, %v2336_v7  ;;  %v2339_v23 = vadd.f32 %v1183_v13, %v1090_v3 }
 0x288   :  { %v1187_v1 = vpop.f32.mrf.mxu0 }
 0x289   :  { %1877 = vpow2.f32 %v1234_v15  ;;  %v1236_v40 = vmul.f32 1.442695, %v1225_v5  ;;  %v1226_v14 = vsub.f32 0.0, %v1216_v16  ;;  %v2341_v17 = vadd.f32 %v1187_v1, %v1086_v2 }
 0x28a   :  { %v1217_v18 = vand.u32 2147483647, %v2339_v23  ;;  %v1189_v19 = vpop.f32.mrf.mxu0 }
 0x28b   :  { %1879 = vpow2.f32 %v1236_v40  ;;  %v1238_v20 = vmul.f32 1.442695, %v1226_v14  ;;  %v1218_v21 = vand.u32 2147483647, %v2341_v17  ;;  %v2345_v26 = vadd.f32 %v1189_v19, %v1090_v3 }
 0x28c   :  { %v1227_v25 = vsub.f32 0.0, %v1217_v18  ;;  %v1191_v27 = vpop.f32.mrf.mxu0  ;;  %v1205_v18 = vmax.f32 %v2333_v9, 0.0 }
 0x28d   :  { %1881 = vpow2.f32 %v1238_v20  ;;  %v1228_v28 = vsub.f32 0.0, %v1218_v21  ;;  %v2347_v29 = vadd.f32 %v1191_v27, %v1086_v2  ;;  %v1219_v31 = vand.u32 2147483647, %v2345_v26 }
 0x28e   :  { %v1240_v30 = vmul.f32 1.442695, %v1227_v25  ;;  %v1193_v32 = vpop.f32.mrf.mxu0  ;;  %v1204_v20 = vmax.f32 %v2330_v4, 0.0  ;;  %v1206_v21 = vmax.f32 %v2336_v7, 0.0 }
 0x28f   :  { %v1242_v33 = vmul.f32 1.442695, %v1228_v28  ;;  %v1220_v58 = vand.u32 2147483647, %v2347_v29  ;;  %v2351_v34 = vadd.f32 %v1193_v32, %v1090_v3  ;;  %v1229_v35 = vsub.f32 0.0, %v1219_v31 }
 0x290   :  { %1883 = vpow2.f32 %v1240_v30  ;;  %v1197_v36 = vpop.f32.mrf.mxu0 }
 0x291   :  { %1885 = vpow2.f32 %v1242_v33  ;;  %v1230_v37 = vsub.f32 0.0, %v1220_v58  ;;  %v1221_v38 = vand.u32 2147483647, %v2351_v34  ;;  %v1244_v39 = vmul.f32 1.442695, %v1229_v35 }
 0x292   :  { %v2354_v41 = vadd.f32 %v1197_v36, %v1086_v2  ;;  %v1199_v42 = vpop.f32.mrf.mxu0  ;;  %v1207_v33 = vmax.f32 %v2339_v23, 0.0 }
 0x293   :  { %v1246_v43 = vmul.f32 1.442695, %v1230_v37  ;;  %v1231_v44 = vsub.f32 0.0, %v1221_v38  ;;  %v2356_v45 = vadd.f32 %v1199_v42, %v1090_v3  ;;  %1887 = vpow2.f32 %v1244_v39 }
 0x294   :  { %v1222_v46 = vand.u32 2147483647, %v2354_v41  ;;  %v1201_v47 = vpop.f32.mrf.mxu0  ;;  %v1208_v39 = vmax.f32 %v2341_v17, 0.0  ;;  %v1209_v42 = vmax.f32 %v2345_v26, 0.0 }
 0x295   :  { %1889 = vpow2.f32 %v1246_v43  ;;  %v1248_v48 = vmul.f32 1.442695, %v1231_v44  ;;  %v1223_v22 = vand.u32 2147483647, %v2356_v45  ;;  %v1210_v44 = vmax.f32 %v2347_v29, 0.0 }
 0x296   :  { %v1878_v49 = vpop.eup %1877  ;;  %v1232_v50 = vsub.f32 0.0, %v1222_v46  ;;  %v1202_v24 = vpop.f32.mrf.mxu0 }
 0x297   :  { %v1254_v51 = vadd.f32 1.0, %v1878_v49  ;;  %1891 = vpow2.f32 %v1248_v48  ;;  %v1233_v52 = vsub.f32 0.0, %v1223_v22 }
 0x298   :  { %v1880_v53 = vpop.eup %1879  ;;  %v1250_v54 = vmul.f32 1.442695, %v1232_v50  ;;  %v1211_v50 = vmax.f32 %v2351_v34, 0.0 }
 0x299   :  { %1893 = vlog2.f32 %v1254_v51  ;;  %v1255_v55 = vadd.f32 1.0, %v1880_v53  ;;  %v1252_v56 = vmul.f32 1.442695, %v1233_v52 }
 0x29a   :  { %v1882_v57 = vpop.eup %1881  ;;  %1895 = vpow2.f32 %v1250_v54 }
 0x29b   :  { %1897 = vlog2.f32 %v1255_v55  ;;  %v1256_v59 = vadd.f32 1.0, %v1882_v57  ;;  %v1212_v55 = vmax.f32 %v2354_v41, 0.0 }
 0x29c   :  { %1899 = vpow2.f32 %v1252_v56  ;;  %v1213_v56 = vmax.f32 %v2356_v45, 0.0 }
 0x29d   :  { %v1884_v60 = vpop.eup %1883  ;;  %1901 = vlog2.f32 %v1256_v59 }
 0x29e   :  { %v1886_v62 = vpop.eup %1885  ;;  %v1257_v0 = vadd.f32 1.0, %v1884_v60 }
 0x29f   :  { %v1258_v2 = vadd.f32 1.0, %v1886_v62 }
 0x2a0   :  { %1903 = vlog2.f32 %v1257_v0  ;;  %v1888_v3 = vpop.eup %1887 }
 0x2a1   :  { %1905 = vlog2.f32 %v1258_v2  ;;  %v1259_v6 = vadd.f32 1.0, %v1888_v3 }
 0x2a2   :  { %v1890_v63 = vpop.eup %1889 }
 0x2a3   :  { %v1260_v8 = vadd.f32 1.0, %v1890_v63  ;;  %1907 = vlog2.f32 %v1259_v6 }
 0x2a4   :  { %v1892_v10 = vpop.eup %1891 }
 0x2a5   :  { %1909 = vlog2.f32 %v1260_v8  ;;  %v1261_v61 = vadd.f32 1.0, %v1892_v10 }
 0x2a6   :  { %v1894_v12 = vpop.eup %1893 }
 0x2a7   :  { %v1896_v13 = vpop.eup %1895  ;;  %1911 = vlog2.f32 %v1261_v61  ;;  %v1265_v1 = vmul.f32 0.6931472, %v1894_v12 }
 0x2a8   :  { %v1898_v15 = vpop.eup %1897  ;;  %v1262_v5 = vadd.f32 1.0, %v1896_v13 }
 0x2a9   :  { %v1900_v16 = vpop.eup %1899  ;;  %v1267_v40 = vmul.f32 0.6931472, %v1898_v15  ;;  %v1284_v30 = vadd.f32 %v1265_v1, %v1204_v20 }
 0x2aa   :  { %v1902_v14 = vpop.eup %1901  ;;  %1913 = vlog2.f32 %v1262_v5  ;;  %v1263_v19 = vadd.f32 1.0, %v1900_v16 }
 0x2ab   :  { %v1269_v25 = vmul.f32 0.6931472, %v1902_v14  ;;  %v1285_v27 = vadd.f32 %v1267_v40, %v1205_v18 }
 0x2ac   :  { %1915 = vlog2.f32 %v1263_v19 }
 0x2ad   :  { %v1904_v28 = vpop.eup %1903  ;;  %v1286_v31 = vadd.f32 %v1269_v25, %v1206_v21 }
 0x2ae   :  { %v1906_v32 = vpop.eup %1905  ;;  %v1271_v58 = vmul.f32 0.6931472, %v1904_v28 }
 0x2af   :  { %1917 = vtanh.f32 %v1286_v31  ;;  %v1273_v36 = vmul.f32 0.6931472, %v1906_v32 }
 0x2b0   :  { %1919 = vtanh.f32 %v1285_v27  ;;  %v1287_v35 = vadd.f32 %v1271_v58, %v1207_v33  ;;  %v1908_v37 = vpop.eup %1907 }
 0x2b1   :  { %1921 = vtanh.f32 %v1284_v30  ;;  %v1275_v43 = vmul.f32 0.6931472, %v1908_v37  ;;  %v1288_v48 = vadd.f32 %v1273_v36, %v1208_v39 }
 0x2b2   :  { %v1910_v38 = vpop.eup %1909  ;;  %1923 = vtanh.f32 %v1287_v35 }
 0x2b3   :  { %v1277_v46 = vmul.f32 0.6931472, %v1910_v38  ;;  %v1289_v22 = vadd.f32 %v1275_v43, %v1209_v42 }
 0x2b4   :  { %v1912_v47 = vpop.eup %1911 }
 0x2b5   :  { %v1290_v49 = vadd.f32 %v1277_v46, %v1210_v44  ;;  %v1279_v24 = vmul.f32 0.6931472, %v1912_v47  ;;  %1925 = vtanh.f32 %v1289_v22 }
 0x2b7   :  { %v1914_v51 = vpop.eup %1913  ;;  %1927 = vtanh.f32 %v1290_v49  ;;  %v1291_v52 = vadd.f32 %v1279_v24, %v1211_v50 }
 0x2b8   :  { %1929 = vtanh.f32 %v1288_v48  ;;  %v1281_v53 = vmul.f32 0.6931472, %v1914_v51 }
 0x2b9   :  { %v1916_v54 = vpop.eup %1915  ;;  %1931 = vtanh.f32 %v1291_v52 }
 0x2ba   :  { %v1283_v57 = vmul.f32 0.6931472, %v1916_v54  ;;  %v1292_v59 = vadd.f32 %v1281_v53, %v1212_v55 }
 0x2bc   :  { %v1918_v60 = vpop.eup %1917  ;;  %v1293_v62 = vadd.f32 %v1283_v57, %v1213_v56 }
 0x2bd   :  { %v1920_v0 = vpop.eup %1919  ;;  %v1306_v63 = vmul.f32 %v1918_v60, %v2336_v7 }
 0x2be   :  { %v1922_v2 = vpop.eup %1921  ;;  %1933 = vtanh.f32 %v1293_v62  ;;  %v1305_v6 = vmul.f32 %v1920_v0, %v2333_v9 }
 0x2bf   :  { %v1924_v3 = vpop.eup %1923  ;;  %1935 = vtanh.f32 %v1292_v59  ;;  %v1304_v10 = vmul.f32 %v1922_v2, %v2330_v4 }
 0x2c0   :  { %v1307_v8 = vmul.f32 %v1924_v3, %v2339_v23 }
 0x2c1   :  { %v1314_v13 = vpack.c.bf16 %v1306_v63, %v1304_v10 }
 0x2c2   :  { %v1315_v61 = vpack.c.bf16 %v1307_v8, %v1305_v6  ;;  %v1926_v12 = vpop.eup %1925 }
 0x2c3   :  { %v1309_v1 = vmul.f32 %v1926_v12, %v2345_v26 }
 0x2c4   :  { %v1928_v15 = vpop.eup %1927  ;;  %1487 = vmatprep.mubr.bf16.mxu1 %v1315_v61 }
 0x2c5   :  { %v1930_v5 = vpop.eup %1929  ;;  %1488 = vmatmul.mubr.bf16.vlgmr.msra.gmra.mxu1 %v1314_v13  ;;  %v1310_v40 = vmul.f32 %v1928_v15, %v2347_v29  ;;  %v1724_v29 = vld [vmem:[%s2438_s11] ss:$0 sm:$0xff] }
 0x2c6   :  { %v1932_v16 = vpop.eup %1931  ;;  %v1308_v9 = vmul.f32 %v1930_v5, %v2341_v17 }
 0x2c7   :  { %v1311_v7 = vmul.f32 %v1932_v16, %v2351_v34 }
 0x2c8   :  { %v1316_v4 = vpack.c.bf16 %v1310_v40, %v1308_v9 }
 0x2c9   :  { %v1317_v14 = vpack.c.bf16 %v1311_v7, %v1309_v1 }
 0x2cb   :  { %v1934_v23 = vpop.eup %1933  ;;  %1495 = vmatprep.mubr.bf16.mxu1 %v1317_v14 }
 0x2cc   :  { %v1936_v18 = vpop.eup %1935  ;;  %v1313_v19 = vmul.f32 %v1934_v23, %v2356_v45 }
 0x2cd   :  { %1496 = vmatmul.mubr.bf16.gmra.mxu1 %v1316_v4  ;;  %v1312_v21 = vmul.f32 %v1936_v18, %v2354_v41 }
 0x2ce   :  { %v1319_v20 = vpack.c.bf16 %v1313_v19, %v1313_v19 }
 0x2cf   :  { %v1318_v25 = vpack.c.bf16 %v1312_v21, %v1312_v21 }
 0x2d0   :  { %1503 = vmatprep.mubr.bf16.mxu1 %v1319_v20 }
 0x2d5   :  { %1504 = vmatmul.mubr.bf16.gmra.mxu1 %v1318_v25 }
 0x385   :  { %v1771_v26 = vpop.f32.mrf.mxu1 }
 0x387   :  { %v1772_v17 = vpop.f32.mrf.mxu1 }
 0x388   :  { %v1773_v34 = vadd.f32 %v1772_v17, %v1771_v26 }
 0x389   :  { %v1774_v27 = vpop.f32.mrf.mxu1 }
 0x38a   :  { %v1490_v28 = vadd.f32 %v1773_v34, %v1724_v29 }
 0x38b   :  { %v1775_v30 = vpop.f32.mrf.mxu1 }
 0x38c   :  { %v1516_v31 = vcombine.high %v1490_v28, %v1490_v28  ;;  %v1523_v45 = vrot.slane %v1490_v28, %v2034_v11  ;;  %v1776_v32 = vadd.f32 %v1775_v30, %v1774_v27 }
 0x38d   :  { %v1777_v33 = vpop.f32.mrf.mxu1 }
 0x38e   :  { %v1530_v41 = vrot.slane %v1516_v31, %v2034_v11  ;;  %v1531_v58 = vcombine.high %v1523_v45, %v1523_v45  ;;  %v1493_v35 = vadd.f32 %v1776_v32, %v1724_v29 }
 0x38f   :  { %v1778_v36 = vpop.f32.mrf.mxu1 }
 0x390   :  { %v1532_v37 = vcombine.high %v1530_v41, %v1530_v41  ;;  %v1592_v38 = vcombine.low %v1523_v45, %v1531_v58  ;;  %v1533_v39 = vcombine.high %v1493_v35, %v1493_v35  ;;  %v1540_v42 = vrot.slane %v1493_v35, %v2034_v11 }
 0x391   :  { %v1779_v43 = vadd.f32 %v1778_v36, %v1777_v33  ;;  %v1780_v44 = vpop.f32.mrf.mxu1 }
 0x392   :  { %v1593_v46 = vcombine.low %v1530_v41, %v1532_v37  ;;  %v1547_v47 = vrot.slane %v1533_v39, %v2034_v11  ;;  %v1548_v48 = vcombine.high %v1540_v42, %v1540_v42  ;;  %v1600_v22 = vrot.slane %v1592_v38, %v2034_v11 }
 0x393   :  { %v1498_v49 = vadd.f32 %v1779_v43, %v1724_v29  ;;  %v1781_v50 = vpop.f32.mrf.mxu1 }
 0x394   :  { %v1607_v24 = vrot.slane %v1593_v46, %v2034_v11  ;;  %v1549_v51 = vcombine.high %v1547_v47, %v1547_v47  ;;  %v1609_v52 = vcombine.low %v1540_v42, %v1548_v48  ;;  %v1782_v53 = vadd.f32 %v1781_v50, %v1780_v44 }
 0x395   :  { %v1550_v54 = vcombine.high %v1498_v49, %v1498_v49  ;;  %v1557_v55 = vrot.slane %v1498_v49, %v2034_v11  ;;  %v1783_v56 = vpop.f32.mrf.mxu1 }
 0x396   :  { %v1608_v57 = vcombine.low %v1600_v22, %v1607_v24  ;;  %v1610_v59 = vcombine.low %v1547_v47, %v1549_v51  ;;  %v1501_v60 = vadd.f32 %v1782_v53, %v1724_v29  ;;  %v1617_v62 = vrot.slane %v1609_v52, %v2034_v11 }
 0x397   :  { %v1564_v0 = vrot.slane %v1550_v54, %v2034_v11  ;;  %v1565_v2 = vcombine.high %v1557_v55, %v1557_v55  ;;  %v1632_v3 = vrot.slane %v1557_v55, %v2034_v11  ;;  %v1784_v63 = vpop.f32.mrf.mxu1 }
 0x398   :  { %1680 = vst.msk [vmem:[%s2439_s13] sm:$0xff] %vm1133_vm7, %v1608_v57  ;;  %v1624_v6 = vrot.slane %v1610_v59, %v2034_v11  ;;  %v1567_v8 = vcombine.high %v1501_v60, %v1501_v60  ;;  %v1574_v10 = vrot.slane %v1501_v60, %v2034_v11  ;;  %v1785_v61 = vadd.f32 %v1784_v63, %v1783_v56 }
 0x399   :  { %v1633_v12 = vcombine.low %v1565_v2, %v1564_v0  ;;  %1683 = vst.msk [vmem:[%s2439_s13 + $0x10] sm:$0x3] %vm1682_vm8, %v1632_v3  ;;  %v1566_v13 = vcombine.high %v1564_v0, %v1564_v0  ;;  %v1786_v15 = vpop.f32.mrf.mxu1 }
 0x39a   :  { %v1625_v5 = vcombine.low %v1617_v62, %v1624_v6  ;;  %v1581_v16 = vrot.slane %v1567_v8, %v2034_v11  ;;  %v1582_v1 = vcombine.high %v1574_v10, %v1574_v10  ;;  %v1506_v40 = vadd.f32 %v1785_v61, %v1724_v29 }
 0x39b   :  { %v1634_v7 = vcombine.low %v1566_v13, %v1574_v10  ;;  %v1787_v9 = vpop.f32.mrf.mxu1  ;;  %v1641_v18 = vrot.slane %v1633_v12, %v2034_v11 }
 0x39c   :  { %1681 = vst.msk [vmem:[%s2439_s13 + $0x8] sm:$0xff] %vm1133_vm7, %v1625_v5  ;;  %v1650_v14 = vcombine.low %v1582_v1, %v1581_v16  ;;  %v1583_v23 = vcombine.high %v1581_v16, %v1581_v16  ;;  %v1590_v4 = vrot.slane %v1506_v40, %v2034_v11 }
 0x39d   :  { %v1648_v19 = vrot.slane %v1634_v7, %v2034_v11 }
 0x39e   :  { %v1591_v20 = vcombine.high %v1590_v4, %v1590_v4  ;;  %v1651_v21 = vcombine.low %v1583_v23, %v1590_v4  ;;  %v1658_v26 = vrot.slane %v1650_v14, %v2034_v11 }
 0x39f   :  { %v1649_v25 = vcombine.low %v1641_v18, %v1648_v19 }
 0x3a0   :  { %v1665_v29 = vrot.slane %v1651_v21, %v2034_v11  ;;  %v1673_v17 = vrot.slane %v1591_v20, %v2034_v11 }
 0x3a1   :  { %1684 = vst.msk [vmem:[%s2439_s13 + $0x18] sm:$0xff] %vm1133_vm7, %v1649_v25 }
 0x3a2   :  { %v1666_v34 = vcombine.low %v1658_v26, %v1665_v29  ;;  %1686 = vst.msk [vmem:[%s2439_s13 + $0x28] sm:$0x3] %vm1682_vm8, %v1673_v17 }
 0x3a4   :  { %1685 = vst.msk [vmem:[%s2439_s13 + $0x20] sm:$0xff] %vm1133_vm7, %v1666_v34 }

</bundles_post_ra>
